<compile_context>
chip_gen: v5e
topology: v5e:2x2
jax: 0.10.0
libtpu: 0.0.40
codegen_flags: <defaults>
</compile_context>

<pallas_src>
import functools

import jax
import jax.numpy as jnp
from jax import lax
from jax.experimental import pallas as pl
from jax.experimental.pallas import tpu as pltpu

_EPS = 1e-6


def _compound_partials_kernel(pred_ref, lab_ref, *out_refs, use_loss2):
    """One spatial tile -> CE partial sum (+ optional dice partials)."""
    ce_ref = out_refs[0]

    logits = pred_ref[...].astype(jnp.float32)            # (N, C, TS)
    n, c, ts = logits.shape
    labels = lab_ref[...]                                  # (N, TS) int32

    # Rebuild the one-hot mask on-chip (saves a C-times-larger HBM stream).
    t = (lax.broadcasted_iota(jnp.int32, (n, c, ts), 1)
         == labels[:, None, :]).astype(jnp.float32)        # (N, C, TS)

    # log-softmax / softmax over the channel (sublane) axis.
    m = jnp.max(logits, axis=1, keepdims=True)             # (N, 1, TS)
    z = logits - m
    e = jnp.exp(z)
    denom = jnp.sum(e, axis=1, keepdims=True)              # (N, 1, TS)
    log_probs = z - jnp.log(denom)                         # (N, C, TS)

    # loss1 (cross-entropy) partial: per-tile sum of -log p[label].
    ce_ref[...] = -jnp.sum(t * log_probs, axis=(0, 1, 2), keepdims=True)  # (1,1,1)

    if use_loss2:  # static gate: mirrors `alpha2 == 0 or loss2 is None`
        inter_ref, dsum_ref = out_refs[1], out_refs[2]
        # approx=False keeps the 1e-5 self-test tolerance; flip to approx=True
        # (EUP slot) only if the kernel ever becomes VALU-bound.
        probs = e * pl.reciprocal(denom, approx=False)                      # (N, C, TS)
        inter_ref[...] = jnp.sum(probs * t, axis=(0, 2), keepdims=True)     # (1, C, 1)
        dsum_ref[...] = jnp.sum(probs + t, axis=(0, 2), keepdims=True)      # (1, C, 1)


def _pick_tile_s(S, N, C, pred_itemsize, vmem_budget_bytes=10 << 20):
    """Largest multiple-of-128 divisor of S fitting a conservative VMEM budget.

    Budget: 2 pipeline buffers per input + ~8 live f32 (N, C, tile) temporaries
    in the body.  10 MiB stays under the default scoped VMEM limit on all of
    v5e (16 MiB), v6e (32 MiB) and v7x (32 MiB), so no vmem_limit_bytes needed.
    """
    best = None
    t = 128
    while t <= S:
        if S % t == 0:
            footprint = (2 * (N * C * t * pred_itemsize + N * t * 4)
                         + 8 * N * C * t * 4)
            if footprint <= vmem_budget_bytes:
                best = t
        t += 128
    return best if best is not None else 128


def compound_loss_pallas(y_pred, y_true, *, alpha1=1.0, alpha2=0.0,
                         have_loss2=True, tile_s=None):
    """y_pred: (N, C, H, W) float (any float dtype).
    y_true: integer labels (N, H, W) [preferred] or one-hot (N, C, H, W).
    Returns scalar loss = alpha1 * CE (+ alpha2 * Dice when active)."""
    N, C, H, W = y_pred.shape
    S = H * W
    assert S % 128 == 0, "H*W must be a multiple of 128 (TPU lane tile)"

    use_loss2 = bool(have_loss2) and (alpha2 != 0.0)

    pred = y_pred.reshape(N, C, S)                 # keep caller dtype (bf16 ok)
    if y_true.ndim == 4:                           # one-hot compat path
        labels = jnp.argmax(y_true, axis=1).reshape(N, S).astype(jnp.int32)
    else:                                          # integer labels (fast path)
        labels = y_true.reshape(N, S).astype(jnp.int32)

    if tile_s is None:
        tile_s = _pick_tile_s(S, N, C, pred.dtype.itemsize)
    assert S % tile_s == 0 and tile_s % 128 == 0
    num_tiles = S // tile_s

    kernel = functools.partial(_compound_partials_kernel, use_loss2=use_loss2)

    out_shapes = [jax.ShapeDtypeStruct((num_tiles, 1, 1), jnp.float32)]
    out_specs = [pl.BlockSpec((1, 1, 1), lambda s: (s, 0, 0))]
    if use_loss2:
        out_shapes += [jax.ShapeDtypeStruct((num_tiles, C, 1), jnp.float32)] * 2
        out_specs += [pl.BlockSpec((1, C, 1), lambda s: (s, 0, 0))] * 2

    outs = pl.pallas_call(
        kernel,
        out_shape=tuple(out_shapes),
        grid=(num_tiles,),
        in_specs=[
            pl.BlockSpec((N, C, tile_s), lambda s: (0, 0, s)),
            pl.BlockSpec((N, tile_s), lambda s: (0, s)),
        ],
        out_specs=tuple(out_specs),
        compiler_params=pltpu.CompilerParams(
            dimension_semantics=("parallel",)),  # disjoint per-tile partials
    )(pred, labels)

    # Tiny final combine in plain JAX (O(num_tiles * C) work).
    ce_mean = jnp.sum(outs[0]) / jnp.float32(N * S)
    total = alpha1 * ce_mean
    if use_loss2:
        inter = jnp.sum(outs[1][:, :, 0], axis=0)          # (C,)
        dsum = jnp.sum(outs[2][:, :, 0], axis=0)           # (C,)
        dice = (2.0 * inter + _EPS) / (dsum + _EPS)
        total = total + alpha2 * (1.0 - jnp.mean(dice))
    return total


class CompoundLoss:
    """Mirror of the PyTorch CompoundLoss forward (loss1=CE, loss2=Dice, fused)."""

    def __init__(self, alpha1=1.0, alpha2=0.0, have_loss2=True):
        self.alpha1 = alpha1
        self.alpha2 = alpha2
        self.have_loss2 = have_loss2

    def __call__(self, y_pred, y_true, y_true_sk=None):
        # TODO(synk): y_true_sk (skeleton target) path not exercised; the
        # concrete losses chosen here are 2-argument losses.
        return compound_loss_pallas(
            y_pred, y_true,
            alpha1=self.alpha1, alpha2=self.alpha2, have_loss2=self.have_loss2)


def _reference_compound(y_pred, y_true_onehot, alpha1, alpha2, have_loss2):
    logp = jax.nn.log_softmax(y_pred, axis=1)
    ce = -jnp.mean(jnp.sum(y_true_onehot * logp, axis=1))
    p = jax.nn.softmax(y_pred, axis=1)
    inter = jnp.sum(p * y_true_onehot, axis=(0, 2, 3))
    psum = jnp.sum(p, axis=(0, 2, 3))
    tsum = jnp.sum(y_true_onehot, axis=(0, 2, 3))
    dice_loss = 1.0 - jnp.mean((2.0 * inter + _EPS) / (psum + tsum + _EPS))
    if have_loss2 and alpha2 != 0.0:
        return alpha1 * ce + alpha2 * dice_loss
    return alpha1 * ce


if __name__ == "__main__":
    key = jax.random.PRNGKey(0)
    k1, k2 = jax.random.split(key)

    N, C, H, W = 2, 4, 16, 16
    y_pred = jax.random.normal(k1, (N, C, H, W), dtype=jnp.float32)
    labels = jax.random.randint(k2, (N, H, W), 0, C)
    y_true_onehot = jax.nn.one_hot(labels, C, axis=1, dtype=jnp.float32)

    # Case 1: both losses active, integer-label fast path.
    loss_fn = CompoundLoss(alpha1=1.0, alpha2=0.5, have_loss2=True)
    out = jax.block_until_ready(loss_fn(y_pred, labels))
    ref = _reference_compound(y_pred, y_true_onehot, 1.0, 0.5, True)
    assert jnp.allclose(out, ref, rtol=1e-5, atol=1e-5), (out, ref)

    # Case 2: alpha2 == 0 -> only alpha1 * loss1 (static shortcut branch).
    loss_fn2 = CompoundLoss(alpha1=2.0, alpha2=0.0, have_loss2=True)
    out2 = jax.block_until_ready(loss_fn2(y_pred, labels))
    ref2 = _reference_compound(y_pred, y_true_onehot, 2.0, 0.0, True)
    assert jnp.allclose(out2, ref2, rtol=1e-5, atol=1e-5), (out2, ref2)

    # Case 3: bf16 logits (half the DMA traffic) + one-hot compat path.
    y_pred_bf16 = y_pred.astype(jnp.bfloat16)
    out3 = jax.block_until_ready(loss_fn(y_pred_bf16, y_true_onehot))
    ref3 = _reference_compound(y_pred_bf16.astype(jnp.float32),
                               y_true_onehot, 1.0, 0.5, True)
    assert jnp.allclose(out3, ref3, rtol=1e-3, atol=1e-3), (out3, ref3)

    print("KERNEL_OK")
</pallas_src>

<mosaic_0001>
module attributes {stable_mosaic.version = 11 : i64} {
  func.func @_compound_partials_kernel(%arg0: i32, %arg1: memref<2x4x256xf32, #tpu.memory_space<vmem>>, %arg2: memref<2x256xi32, #tpu.memory_space<vmem>>, %arg3: memref<1x1x1xf32, #tpu.memory_space<vmem>>, %arg4: memref<1x4x1xf32, #tpu.memory_space<vmem>>, %arg5: memref<1x4x1xf32, #tpu.memory_space<vmem>>) attributes {dimension_semantics = [#tpu.dimension_semantics<parallel>], iteration_bounds = array<i64: 1>, scalar_prefetch = 0 : i64, scratch_operands = 0 : i64, tpu.core_type = #tpu.core_type<tc>, window_params = [{transform_indices = @transform_0, window_bounds = array<i64: 2, 4, 256>}, {transform_indices = @transform_1, window_bounds = array<i64: 2, 256>}, {transform_indices = @transform_2, window_bounds = array<i64: 1, 1, 1>}, {transform_indices = @transform_3, window_bounds = array<i64: 1, 4, 1>}, {transform_indices = @transform_4, window_bounds = array<i64: 1, 4, 1>}]} {
    %c0 = arith.constant 0 : index
    %c0_0 = arith.constant 0 : index
    %c0_1 = arith.constant 0 : index
    %0 = vector.load %arg1[%c0, %c0_0, %c0_1] : memref<2x4x256xf32, #tpu.memory_space<vmem>>, vector<2x4x256xf32>
    %c0_2 = arith.constant 0 : index
    %c0_3 = arith.constant 0 : index
    %1 = vector.load %arg2[%c0_2, %c0_3] : memref<2x256xi32, #tpu.memory_space<vmem>>, vector<2x256xi32>
    %2 = tpu.iota {dimensions = array<i32: 1>} : vector<2x4x256xi32>
    %3 = vector.shape_cast %1 : vector<2x256xi32> to vector<2x1x256xi32>
    %4 = vector.broadcast %3 : vector<2x1x256xi32> to vector<2x4x256xi32>
    %5 = arith.cmpi eq, %2, %4 : vector<2x4x256xi32>
    %6 = arith.extui %5 : vector<2x4x256xi1> to vector<2x4x256xi32>
    %7 = arith.sitofp %6 : vector<2x4x256xi32> to vector<2x4x256xf32>
    %cst = arith.constant dense<0xFF800000> : vector<2x256xf32>
    %8 = vector.multi_reduction <maximumf>, %0, %cst [1] : vector<2x4x256xf32> to vector<2x256xf32>
    %9 = vector.shape_cast %8 : vector<2x256xf32> to vector<2x1x256xf32>
    %10 = vector.broadcast %9 : vector<2x1x256xf32> to vector<2x4x256xf32>
    %11 = arith.subf %0, %10 : vector<2x4x256xf32>
    %12 = math.exp %11 : vector<2x4x256xf32>
    %cst_4 = arith.constant dense<0.000000e+00> : vector<2x256xf32>
    %13 = vector.multi_reduction <add>, %12, %cst_4 [1] : vector<2x4x256xf32> to vector<2x256xf32>
    %14 = vector.shape_cast %13 : vector<2x256xf32> to vector<2x1x256xf32>
    %15 = math.log %14 : vector<2x1x256xf32>
    %16 = vector.broadcast %15 : vector<2x1x256xf32> to vector<2x4x256xf32>
    %17 = arith.subf %11, %16 : vector<2x4x256xf32>
    %18 = arith.mulf %7, %17 : vector<2x4x256xf32>
    %19 = vector.shape_cast %18 : vector<2x4x256xf32> to vector<1x2x4x256xf32>
    %cst_5 = arith.constant dense<0.000000e+00> : vector<1xf32>
    %20 = vector.multi_reduction <add>, %19, %cst_5 [1, 2, 3] : vector<1x2x4x256xf32> to vector<1xf32>
    %21 = vector.shape_cast %20 : vector<1xf32> to vector<1x1x1x1xf32>
    %22 = vector.extract %21[0, 0, 0, 0] : f32 from vector<1x1x1x1xf32>
    %23 = vector.broadcast %22 : f32 to vector<1x1x1xf32>
    %cst_6 = arith.constant 0.000000e+00 : f32
    %24 = vector.broadcast %cst_6 : f32 to vector<1x1x1xf32>
    %25 = arith.subf %24, %23 : vector<1x1x1xf32>
    %c0_7 = arith.constant 0 : index
    %c0_8 = arith.constant 0 : index
    %c0_9 = arith.constant 0 : index
    %26 = vector.load %arg3[%c0_7, %c0_8, %c0_9] : memref<1x1x1xf32, #tpu.memory_space<vmem>>, vector<1x1x1xf32>
    tpu.vector_store %arg3[%c0_7, %c0_8, %c0_9], %25 {strides = array<i32>} : memref<1x1x1xf32, #tpu.memory_space<vmem>>, vector<1x1x1xf32>,
    %27 = tpu.reciprocal %14 : vector<2x1x256xf32> -> vector<2x1x256xf32>
    %28 = vector.broadcast %27 : vector<2x1x256xf32> to vector<2x4x256xf32>
    %29 = arith.mulf %12, %28 : vector<2x4x256xf32>
    %30 = arith.mulf %29, %7 : vector<2x4x256xf32>
    %cst_10 = arith.constant dense<0.000000e+00> : vector<4xf32>
    %31 = vector.multi_reduction <add>, %30, %cst_10 [0, 2] : vector<2x4x256xf32> to vector<4xf32>
    %32 = vector.shape_cast %31 : vector<4xf32> to vector<1x4x1xf32>
    %c0_11 = arith.constant 0 : index
    %c0_12 = arith.constant 0 : index
    %c0_13 = arith.constant 0 : index
    %33 = vector.load %arg4[%c0_11, %c0_12, %c0_13] : memref<1x4x1xf32, #tpu.memory_space<vmem>>, vector<1x4x1xf32>
    tpu.vector_store %arg4[%c0_11, %c0_12, %c0_13], %32 {strides = array<i32>} : memref<1x4x1xf32, #tpu.memory_space<vmem>>, vector<1x4x1xf32>,
    %34 = arith.addf %29, %7 : vector<2x4x256xf32>
    %cst_14 = arith.constant dense<0.000000e+00> : vector<4xf32>
    %35 = vector.multi_reduction <add>, %34, %cst_14 [0, 2] : vector<2x4x256xf32> to vector<4xf32>
    %36 = vector.shape_cast %35 : vector<4xf32> to vector<1x4x1xf32>
    %c0_15 = arith.constant 0 : index
    %c0_16 = arith.constant 0 : index
    %c0_17 = arith.constant 0 : index
    %37 = vector.load %arg5[%c0_15, %c0_16, %c0_17] : memref<1x4x1xf32, #tpu.memory_space<vmem>>, vector<1x4x1xf32>
    tpu.vector_store %arg5[%c0_15, %c0_16, %c0_17], %36 {strides = array<i32>} : memref<1x4x1xf32, #tpu.memory_space<vmem>>, vector<1x4x1xf32>,
    return
  }
  func.func @transform_0(%arg0: i32) -> (i32, i32, i32) {
    %c0_i32 = arith.constant 0 : i32
    %c0_i32_0 = arith.constant 0 : i32
    %c0_i32_1 = arith.constant 0 : i32
    return %c0_i32, %c0_i32_0, %arg0 : i32, i32, i32
  }
  func.func @transform_1(%arg0: i32) -> (i32, i32) {
    %c0_i32 = arith.constant 0 : i32
    %c0_i32_0 = arith.constant 0 : i32
    return %c0_i32, %arg0 : i32, i32
  }
  func.func @transform_2(%arg0: i32) -> (i32, i32, i32) {
    %c0_i32 = arith.constant 0 : i32
    %c0_i32_0 = arith.constant 0 : i32
    %c0_i32_1 = arith.constant 0 : i32
    return %arg0, %c0_i32, %c0_i32_0 : i32, i32, i32
  }
  func.func @transform_3(%arg0: i32) -> (i32, i32, i32) {
    %c0_i32 = arith.constant 0 : i32
    %c0_i32_0 = arith.constant 0 : i32
    %c0_i32_1 = arith.constant 0 : i32
    return %arg0, %c0_i32, %c0_i32_0 : i32, i32, i32
  }
  func.func @transform_4(%arg0: i32) -> (i32, i32, i32) {
    %c0_i32 = arith.constant 0 : i32
    %c0_i32_0 = arith.constant 0 : i32
    %c0_i32_1 = arith.constant 0 : i32
    return %arg0, %c0_i32, %c0_i32_0 : i32, i32, i32
  }
}

</mosaic_0001>

<bundles_post_ra>
// kernel: tpu_custom_call.1
= control target key start
LH: loop header
LB: loop body
LE: loop exit
PB: predicated region body
PF: predicated region fallthrough
CT: control target
= control target key end

     0   :  { %10 = vsyncpa [#allocation3], 0  ;;  %s680_s0 = inlined_call_operand.hbm [shape: f32[2,4,256], index: 0, kind: input, shape index: {}]   ;;  %s681_s1 = inlined_call_operand.hbm [shape: s32[2,256], index: 1, kind: input, shape index: {}]   ;;  %s682_s2 = inlined_call_operand.hbm [shape: f32[1,1,1], index: 2, kind: output, shape index: {0}]   ;;  %s683_s3 = inlined_call_operand.vmem [shape: f32[1,4,1], index: 3, kind: output, shape index: {1}]   ;;  %s684_s4 = inlined_call_operand.vmem [shape: f32[1,4,1], index: 4, kind: output, shape index: {2}]  }
   0x1   :  { %11 = vsyncpa [#allocation6], 0 }
   0x2   :  { %12 = vsyncpa [#allocation4], 0  ;;  %s17_s17 = sshll.u32 %s680_s0, 4  ;;  %s503_s18 = smov [#allocation2]   ;;  %s18_s17 = int_to_ptr.hbm [resolvable:$true] %s17_s17 }
   0x3   :  { %s19_s19 = sshll.u32 %s503_s18, 4  ;;  %s31_s22 = sshll.u32 %s681_s1, 4  ;;  %s20_s19 = int_to_ptr.vmem [resolvable:$true] %s19_s19  ;;  %s32_s22 = int_to_ptr.hbm [resolvable:$true] %s31_s22 }
   0x4   :  { %s504_s23 = smov 128   ;;  %s505_s24 = smov 8  }
   0x5   :  { %25 = dma.hbm_to_vmem [thread:$0]  %s18_s17, 256, %s20_s19, [#allocation3], %s504_s23, %s504_s23, %s505_s24  }
   0x6   :  { %s506_s25 = smov [#allocation5]  }
   0x7   :  { %s33_s26 = sshll.u32 %s506_s25, 4  ;;  %s34_s26 = int_to_ptr.vmem [resolvable:$true] %s33_s26 }
   0x8   :  { %36 = dma.hbm_to_vmem [thread:$0]  %s32_s22, 64, %s34_s26, [#allocation6]  }
   0x9   :  { %497 = dma.done.wait [#allocation3], 256  }
   0xa   :  { %498 = vsyncadd [#allocation3], 4294967040 }
   0xb   :  { %499 = dma.done.wait [#allocation6], 64  }
   0xc   :  { %500 = vsyncadd [#allocation6], 4294967232  ;;  %v45_v0 = vld [vmem:[#allocation2] sm:$0xff]  ;;  %v46_v1 = vld [vmem:[#allocation2 + $0x8] sm:$0xff]  ;;  %vm95_vm0 = vcmask 1043456   ;;  %vm59_vm1 = vcmask 1041409  }
   0xd   :  { %84 = vst [vmem:[#allocation1] ss:$2 sm:$0xff] %v45_v0  ;;  %v47_v44 = vld [vmem:[#allocation5] sm:$0xf]  ;;  %vm61_vm2 = vcmask 1043459   ;;  %vm53_vm3 = vcmask 1040384  }
   0xe   :  { %88 = vst [vmem:[#allocation1 + $0x10] ss:$2 sm:$0xff] %v46_v1  ;;  %v50_v45 = vrot.slane %v47_v44, 1  ;;  %v51_v46 = vrot.slane %v47_v44, 2  ;;  %v52_v47 = vrot.slane %v47_v44, 3  ;;  %vm55_vm4 = vcmask 1042434  }
   0xf   :  { %vm63_vm5 = vcmask 1042433   ;;  %vm57_vm6 = vcmask 1041408   ;;  %s508_s29 = smov [#allocation7]   ;;  %s374_s7 = sshll.u32 %s682_s2, 4  ;;  %s375_s7 = int_to_ptr.hbm [resolvable:$true] %s374_s7 }
  0x10   :  { %v60_v50 = vsel %vm59_vm1, %v47_v44, %v50_v45  ;;  %v62_v51 = vsel %vm61_vm2, %v51_v46, %v52_v47  ;;  %s372_s30 = sshll.u32 %s508_s29, 4  ;;  %s373_s30 = int_to_ptr.vmem [resolvable:$true] %s372_s30 }
  0x14   :  { %v85_v2 = vld.sshfl [vmem:[#allocation1] sm:$0xff pattern:$0x75316420]  ;;  %v86_v3 = vld.sshfl [vmem:[#allocation1 + $0x8] sm:$0xff pattern:$0x75316420] }
  0x15   :  { %v89_v4 = vld.sshfl [vmem:[#allocation1 + $0x10] sm:$0xff pattern:$0x75316420]  ;;  %v90_v5 = vld.sshfl [vmem:[#allocation1 + $0x18] sm:$0xff pattern:$0x75316420] }
  0x16   :  { %v96_v6 = vsel %vm95_vm0, %v85_v2, -inf  ;;  %v103_v8 = vsel %vm95_vm0, %v86_v3, -inf  ;;  %v110_v9 = vsel %vm95_vm0, %v89_v4, -inf  ;;  %v117_v10 = vsel %vm95_vm0, %v90_v5, -inf }
  0x17   :  { %v97_v7 = vrot.slane %v96_v6, 4  ;;  %v104_v11 = vrot.slane %v103_v8, 4  ;;  %v111_v12 = vrot.slane %v110_v9, 4  ;;  %v118_v13 = vrot.slane %v117_v10, 4 }
  0x18   :  { %v54_v2 = vsel %vm53_vm3, %v47_v44, %v50_v45  ;;  %v56_v3 = vsel %vm55_vm4, %v51_v46, %v52_v47  ;;  %v64_v4 = vsel %vm63_vm5, %v60_v50, %v62_v51 }
  0x19   :  { %v98_v14 = vmax.f32 %v96_v6, %v97_v7  ;;  %v105_v15 = vmax.f32 %v103_v8, %v104_v11  ;;  %v112_v16 = vmax.f32 %v110_v9, %v111_v12  ;;  %v119_v17 = vmax.f32 %v117_v10, %v118_v13 }
  0x1a   :  { %v48_v13 = vlaneseq }
  0x1b   :  { %v99_v18 = vrot.slane %v98_v14, 2  ;;  %v106_v19 = vrot.slane %v105_v15, 2  ;;  %v113_v20 = vrot.slane %v112_v16, 2  ;;  %v120_v21 = vrot.slane %v119_v17, 2 }
  0x1d   :  { %v100_v22 = vmax.f32 %v98_v14, %v99_v18  ;;  %v107_v23 = vmax.f32 %v105_v15, %v106_v19  ;;  %v114_v24 = vmax.f32 %v112_v16, %v113_v20  ;;  %v121_v25 = vmax.f32 %v119_v17, %v120_v21 }
  0x1e   :  { %v58_v14 = vsel %vm57_vm6, %v54_v2, %v56_v3  ;;  %v65_v15 = vrot.slane %v64_v4, 1 }
  0x1f   :  { %v101_v26 = vrot.slane %v100_v22, 1  ;;  %v108_v27 = vrot.slane %v107_v23, 1  ;;  %v115_v28 = vrot.slane %v114_v24, 1  ;;  %v122_v29 = vrot.slane %v121_v25, 1 }
  0x21   :  { %v102_v30 = vmax.f32 %v100_v22, %v101_v26  ;;  %v109_v31 = vmax.f32 %v107_v23, %v108_v27  ;;  %v116_v32 = vmax.f32 %v114_v24, %v115_v28  ;;  %v123_v33 = vmax.f32 %v121_v25, %v122_v29 }
  0x22   :  { %v49_v23 = vshrl.u32 %v48_v13, 7  ;;  %v66_v24 = vperm.slane %v58_v14, 0  ;;  %v67_v26 = vperm.slane %v58_v14, 1  ;;  %v68_v27 = vperm.slane %v65_v15, 0 }
  0x23   :  { %v128_v34 = vrot.slane %v109_v31, 4  ;;  %v129_v35 = vrot.slane %v123_v33, 4  ;;  %v69_v28 = vperm.slane %v65_v15, 1 }
  0x24   :  { %vm70_vm7 = vcmp.eq.s32.totalorder %v49_v23, %v66_v24  ;;  %vm71_vm8 = vcmp.eq.s32.totalorder %v49_v23, %v67_v26  ;;  %vm72_vm9 = vcmp.eq.s32.totalorder %v49_v23, %v68_v27 }
  0x25   :  { %v130_v36 = vsel %vm95_vm0, %v102_v30, %v128_v34  ;;  %v131_v37 = vsel %vm95_vm0, %v116_v32, %v129_v35  ;;  %vm73_vm10 = vcmp.eq.s32.totalorder %v49_v23, %v69_v28  ;;  %v507_v30 = vmov 0.0  }
  0x26   :  { %v546_v38 = vsub.f32 %v45_v0, %v130_v36  ;;  %v548_v39 = vsub.f32 %v46_v1, %v131_v37  ;;  %v579_v31 = vsel %vm70_vm7, 1.0, %v507_v30  ;;  %v582_v33 = vsel %vm71_vm8, 1.0, %v507_v30 }
  0x27   :  { %v584_v34 = vsel %vm72_vm9, 1.0, %v507_v30  ;;  %v586_v35 = vsel %vm73_vm10, 1.0, %v507_v30 }
  0x28   :  { %v136_v40 = vmul.f32 1.442695, %v546_v38  ;;  %v138_v41 = vmul.f32 1.442695, %v548_v39  ;;  %v311_v28 = vrot.slane %v586_v35, 4 }
  0x2a   :  { %405 = vpow2.f32 %v136_v40 }
  0x2b   :  { %407 = vpow2.f32 %v138_v41  ;;  %v310_v41 = vrot.slane %v582_v33, 4 }
  0x30   :  { %v552_v42 = vpop.eup %405 }
  0x31   :  { %v554_v43 = vpop.eup %407  ;;  %142 = vst [vmem:[#allocation1] ss:$2 sm:$0xff] %v552_v42 }
  0x32   :  { %146 = vst [vmem:[#allocation1 + $0x10] ss:$2 sm:$0xff] %v554_v43 }
  0x38   :  { %v143_v48 = vld.sshfl [vmem:[#allocation1] sm:$0xff pattern:$0x75316420]  ;;  %v144_v49 = vld.sshfl [vmem:[#allocation1 + $0x8] sm:$0xff pattern:$0x75316420] }
  0x39   :  { %v147_v52 = vld.sshfl [vmem:[#allocation1 + $0x10] sm:$0xff pattern:$0x75316420]  ;;  %v148_v53 = vld.sshfl [vmem:[#allocation1 + $0x18] sm:$0xff pattern:$0x75316420] }
  0x3a   :  { %v153_v54 = vsel %vm95_vm0, %v143_v48, 0.0  ;;  %v160_v55 = vsel %vm95_vm0, %v144_v49, 0.0  ;;  %v167_v56 = vsel %vm95_vm0, %v147_v52, 0.0  ;;  %v174_v57 = vsel %vm95_vm0, %v148_v53, 0.0 }
  0x3b   :  { %v154_v58 = vrot.slane %v153_v54, 4  ;;  %v161_v59 = vrot.slane %v160_v55, 4  ;;  %v168_v60 = vrot.slane %v167_v56, 4  ;;  %v175_v61 = vrot.slane %v174_v57, 4 }
  0x3d   :  { %v155_v62 = vadd.f32 %v154_v58, %v153_v54  ;;  %v162_v63 = vadd.f32 %v161_v59, %v160_v55  ;;  %v169_v0 = vadd.f32 %v168_v60, %v167_v56  ;;  %v176_v1 = vadd.f32 %v175_v61, %v174_v57 }
  0x3f   :  { %v156_v5 = vrot.slane %v155_v62, 2  ;;  %v163_v6 = vrot.slane %v162_v63, 2  ;;  %v170_v7 = vrot.slane %v169_v0, 2  ;;  %v177_v8 = vrot.slane %v176_v1, 2 }
  0x41   :  { %v157_v9 = vadd.f32 %v156_v5, %v155_v62  ;;  %v164_v10 = vadd.f32 %v163_v6, %v162_v63  ;;  %v171_v11 = vadd.f32 %v170_v7, %v169_v0  ;;  %v178_v12 = vadd.f32 %v177_v8, %v176_v1 }
  0x43   :  { %v158_v16 = vrot.slane %v157_v9, 1  ;;  %v165_v17 = vrot.slane %v164_v10, 1  ;;  %v172_v18 = vrot.slane %v171_v11, 1  ;;  %v179_v19 = vrot.slane %v178_v12, 1 }
  0x45   :  { %v565_v20 = vadd.f32 %v158_v16, %v157_v9  ;;  %v567_v21 = vadd.f32 %v165_v17, %v164_v10  ;;  %v569_v22 = vadd.f32 %v172_v18, %v171_v11  ;;  %v571_v25 = vadd.f32 %v179_v19, %v178_v12 }
  0x47   :  { %409 = vlog2.f32 %v565_v20  ;;  %vm243_vm11 = vweird.f32 %v565_v20  ;;  %v247_v45 = vand.u32 2147483647, %v565_v20  ;;  %v249_v46 = vand.u32 2147483648, %v565_v20 }
  0x48   :  { %411 = vlog2.f32 %v567_v21  ;;  %vm257_vm12 = vweird.f32 %v567_v21  ;;  %v261_v47 = vand.u32 2147483647, %v567_v21  ;;  %v263_v52 = vand.u32 2147483648, %v567_v21 }
  0x49   :  { %413 = vlog2.f32 %v569_v22  ;;  %vm271_vm13 = vweird.f32 %v569_v22  ;;  %v277_v55 = vand.u32 2147483648, %v569_v22  ;;  %vm285_vm14 = vweird.f32 %v571_v25 }
  0x4a   :  { %415 = vlog2.f32 %v571_v25  ;;  %v291_v60 = vand.u32 2147483648, %v571_v25  ;;  %v289_v9 = vand.u32 2147483647, %v571_v25  ;;  %v264_v11 = vor.u32 1.1754944e-38, %v263_v52 }
  0x4b   :  { %417 = vrcp.f32 %v565_v20  ;;  %v275_v13 = vand.u32 2147483647, %v569_v22  ;;  %v250_v14 = vor.u32 1.1754944e-38, %v249_v46  ;;  %vm262_vm6 = vcmp.eq.f32.partialorder %v261_v47, 8.507059e+37 }
  0x4c   :  { %419 = vrcp.f32 %v567_v21  ;;  %vm248_vm8 = vcmp.eq.f32.partialorder %v247_v45, 8.507059e+37  ;;  %v278_v23 = vor.u32 1.1754944e-38, %v277_v55  ;;  %vm290_vm10 = vcmp.eq.f32.partialorder %v289_v9, 8.507059e+37 }
  0x4d   :  { %v410_v29 = vpop.eup %409  ;;  %421 = vrcp.f32 %v569_v22  ;;  %v312_v55 = vsel %vm95_vm0, %v579_v31, %v310_v41 }
  0x4e   :  { %v412_v32 = vpop.eup %411  ;;  %423 = vrcp.f32 %v571_v25  ;;  %v182_v37 = vmul.f32 0.6931472, %v410_v29 }
  0x4f   :  { %v414_v36 = vpop.eup %413  ;;  %v184_v40 = vmul.f32 0.6931472, %v412_v32 }
  0x50   :  { %v416_v44 = vpop.eup %415  ;;  %v186_v49 = vmul.f32 0.6931472, %v414_v36 }
  0x51   :  { %v418_v48 = vpop.eup %417  ;;  %v188_v50 = vmul.f32 0.6931472, %v416_v44  ;;  %v193_v51 = vrot.slane %v184_v40, 4 }
  0x52   :  { %v420_v53 = vpop.eup %419  ;;  %v239_v54 = vmul.f32 %v418_v48, %v565_v20  ;;  %vm244_vm15 = vweird.f32 %v418_v48 }
  0x53   :  { %v422_v56 = vpop.eup %421  ;;  %v194_v57 = vrot.slane %v188_v50, 4  ;;  %v195_v58 = vsel %vm95_vm0, %v182_v37, %v193_v51  ;;  %v253_v59 = vmul.f32 %v420_v53, %v567_v21  ;;  %vm258_vm1 = vweird.f32 %v420_v53  ;;  %vm610_vm3 = vmor %vm243_vm11, %vm244_vm15 }
  0x54   :  { %v424_v61 = vpop.eup %423  ;;  %v199_v62 = vsub.f32 %v546_v38, %v195_v58  ;;  %v240_v63 = vsub.f32 1.0, %v239_v54  ;;  %v267_v0 = vmul.f32 %v422_v56, %v569_v22  ;;  %vm272_vm2 = vweird.f32 %v422_v56  ;;  %vm617_vm5 = vmor %vm257_vm12, %vm258_vm1 }
  0x55   :  { %v196_v1 = vsel %vm95_vm0, %v186_v49, %v194_v57  ;;  %v254_v2 = vsub.f32 1.0, %v253_v59  ;;  %v281_v3 = vmul.f32 %v424_v61, %v571_v25  ;;  %vm286_vm4 = vweird.f32 %v424_v61  ;;  %vm625_vm7 = vmor %vm271_vm13, %vm272_vm2 }
  0x56   :  { %v200_v4 = vsub.f32 %v548_v39, %v196_v1  ;;  %203 = vst [vmem:[#allocation1] ss:$2 sm:$0xff] %v199_v62  ;;  %v241_v5 = vmul.f32 %v418_v48, %v240_v63  ;;  %v268_v6 = vsub.f32 1.0, %v267_v0  ;;  %vm634_vm9 = vmor %vm285_vm14, %vm286_vm4  ;;  %v292_v21 = vor.u32 1.1754944e-38, %v291_v60 }
  0x57   :  { %v255_v7 = vmul.f32 %v420_v53, %v254_v2  ;;  %v282_v8 = vsub.f32 1.0, %v281_v3  ;;  %vm276_vm11 = vcmp.eq.f32.partialorder %v275_v13, 8.507059e+37  ;;  %v313_v60 = vsel %vm95_vm0, %v584_v34, %v311_v28 }
  0x58   :  { %207 = vst [vmem:[#allocation1 + $0x10] ss:$2 sm:$0xff] %v200_v4  ;;  %v242_v10 = vadd.f32 %v418_v48, %v241_v5  ;;  %v269_v12 = vmul.f32 %v422_v56, %v268_v6  ;;  %vm340_vm12 = vcmask 3072  }
  0x59   :  { %v256_v15 = vadd.f32 %v420_v53, %v255_v7  ;;  %v283_v17 = vmul.f32 %v424_v61, %v282_v8 }
  0x5a   :  { %v246_v18 = vsel %vm610_vm3, %v418_v48, %v242_v10  ;;  %v270_v19 = vadd.f32 %v422_v56, %v269_v12 }
  0x5b   :  { %v260_v22 = vsel %vm617_vm5, %v420_v53, %v256_v15  ;;  %v284_v24 = vadd.f32 %v424_v61, %v283_v17  ;;  %v251_v30 = vsel %vm248_vm8, %v250_v14, %v246_v18 }
  0x5c   :  { %v265_v26 = vsel %vm262_vm6, %v264_v11, %v260_v22  ;;  %v274_v27 = vsel %vm625_vm7, %v422_v56, %v270_v19 }
  0x5d   :  { %v204_v29 = vld.sshfl [vmem:[#allocation1] sm:$0xff pattern:$0x75316420]  ;;  %v205_v25 = vld.sshfl [vmem:[#allocation1 + $0x8] sm:$0xff pattern:$0x75316420]  ;;  %v288_v32 = vsel %vm634_vm9, %v424_v61, %v284_v24  ;;  %v279_v47 = vsel %vm276_vm11, %v278_v23, %v274_v27 }
  0x5e   :  { %v214_v36 = vmul.f32 %v579_v31, %v204_v29  ;;  %v215_v37 = vmul.f32 %v582_v33, %v205_v25  ;;  %v293_v40 = vsel %vm290_vm10, %v292_v21, %v288_v32  ;;  %v298_v44 = vrot.slane %v265_v26, 4 }
  0x5f   :  { %v208_v45 = vld.sshfl [vmem:[#allocation1 + $0x10] sm:$0xff pattern:$0x75316420]  ;;  %v209_v46 = vld.sshfl [vmem:[#allocation1 + $0x18] sm:$0xff pattern:$0x75316420] }
  0x60   :  { %v216_v48 = vmul.f32 %v584_v34, %v208_v45  ;;  %v217_v49 = vmul.f32 %v586_v35, %v209_v46  ;;  %v218_v50 = vsel %vm95_vm0, %v214_v36, 0.0  ;;  %v219_v51 = vsel %vm95_vm0, %v215_v37, 0.0 }
  0x61   :  { %v220_v52 = vadd.f32 %v219_v51, %v218_v50  ;;  %v299_v53 = vrot.slane %v293_v40, 4  ;;  %v300_v54 = vsel %vm95_vm0, %v251_v30, %v298_v44 }
  0x62   :  { %v221_v56 = vsel %vm95_vm0, %v216_v48, 0.0  ;;  %v223_v57 = vsel %vm95_vm0, %v217_v49, 0.0  ;;  %v304_v58 = vmul.f32 %v552_v42, %v300_v54 }
  0x63   :  { %v222_v35 = vadd.f32 %v221_v56, %v220_v52  ;;  %v301_v59 = vsel %vm95_vm0, %v279_v47, %v299_v53 }
  0x64   :  { %v305_v61 = vmul.f32 %v554_v43, %v301_v59  ;;  %v316_v62 = vmul.f32 %v312_v55, %v304_v58  ;;  %v342_v31 = vadd.f32 %v312_v55, %v304_v58 }
  0x65   :  { %v224_v63 = vadd.f32 %v223_v57, %v222_v35 }
  0x66   :  { %v317_v33 = vmul.f32 %v313_v60, %v305_v61  ;;  %320 = vst [vmem:[#allocation1] ss:$2 sm:$0xff] %v316_v62  ;;  %v343_v41 = vadd.f32 %v313_v60, %v305_v61 }
  0x67   :  { %225 = vadd.xlane.f32.xlu0 %v224_v63 }
  0x68   :  { %324 = vst [vmem:[#allocation1 + $0x10] ss:$2 sm:$0xff] %v317_v33 }
  0x6d   :  { %v321_v0 = vld.sshfl [vmem:[#allocation1] sm:$0xff pattern:$0x75316420]  ;;  %v322_v1 = vld.sshfl [vmem:[#allocation1 + $0x8] sm:$0xff pattern:$0x75316420] }
  0x6e   :  { %346 = vst [vmem:[#allocation1] ss:$2 sm:$0xff] %v342_v31  ;;  %v331_v42 = vsel %vm95_vm0, %v321_v0, 0.0  ;;  %v332_v2 = vsel %vm95_vm0, %v322_v1, 0.0 }
  0x6f   :  { %v325_v3 = vld.sshfl [vmem:[#allocation1 + $0x10] sm:$0xff pattern:$0x75316420]  ;;  %v326_v4 = vld.sshfl [vmem:[#allocation1 + $0x18] sm:$0xff pattern:$0x75316420]  ;;  %v333_v34 = vadd.f32 %v332_v2, %v331_v42 }
  0x70   :  { %350 = vst [vmem:[#allocation1 + $0x10] ss:$2 sm:$0xff] %v343_v41  ;;  %v334_v43 = vsel %vm95_vm0, %v325_v3, 0.0  ;;  %v336_v5 = vsel %vm95_vm0, %v326_v4, 0.0 }
  0x71   :  { %v335_v6 = vadd.f32 %v334_v43, %v333_v34 }
  0x73   :  { %v337_v38 = vadd.f32 %v336_v5, %v335_v6 }
  0x75   :  { %v347_v7 = vld.sshfl [vmem:[#allocation1] sm:$0xff pattern:$0x75316420]  ;;  %v348_v8 = vld.sshfl [vmem:[#allocation1 + $0x8] sm:$0xff pattern:$0x75316420]  ;;  %338 = vadd.xlane.f32.xlu0 %v337_v38 }
  0x76   :  { %v357_v9 = vsel %vm95_vm0, %v347_v7, 0.0  ;;  %v358_v10 = vsel %vm95_vm0, %v348_v8, 0.0 }
  0x77   :  { %v351_v39 = vld.sshfl [vmem:[#allocation1 + $0x10] sm:$0xff pattern:$0x75316420]  ;;  %v352_v11 = vld.sshfl [vmem:[#allocation1 + $0x18] sm:$0xff pattern:$0x75316420]  ;;  %v359_v12 = vadd.f32 %v358_v10, %v357_v9 }
  0x78   :  { %v360_v13 = vsel %vm95_vm0, %v351_v39, 0.0  ;;  %v362_v14 = vsel %vm95_vm0, %v352_v11, 0.0  ;;  %vm236_vm0 = vcmask 0  }
  0x79   :  { %v361_v15 = vadd.f32 %v360_v13, %v359_v12 }
  0x7b   :  { %v363_v16 = vadd.f32 %v362_v14, %v361_v15 }
  0x7d   :  { %364 = vadd.xlane.f32.xlu1 %v363_v16 }
  0xda   :  { %v226_v17 = vpop.xlane.xlu0 %225 }
  0xdb   :  { %v227_v18 = vrot.slane %v226_v17, 4 }
  0xdd   :  { %v228_v19 = vadd.f32 %v227_v18, %v226_v17 }
  0xdf   :  { %v229_v20 = vrot.slane %v228_v19, 2 }
  0xe1   :  { %v230_v21 = vadd.f32 %v229_v20, %v228_v19 }
  0xe3   :  { %v231_v22 = vrot.slane %v230_v21, 1 }
  0xe5   :  { %v232_v23 = vadd.f32 %v231_v22, %v230_v21 }
  0xe7   :  { %397 = vpush %v232_v23 }
  0xe8   :  { %v339_v26 = vpop.xlane.xlu0 %338 }
  0xe9   :  { %341 = vst.msk [vmem:[%s683_s3] sm:$0xf] %vm340_vm12, %v339_v26 }
  0xf0   :  { %v365_v24 = vpop.xlane.xlu1 %364 }
  0xf1   :  { %366 = vst.msk [vmem:[%s684_s4] sm:$0xf] %vm340_vm12, %v365_v24 }
 0x118   :  { %s398_s8 = spop %397 }
 0x119   :  { %v234_v27 = vstv %s398_s8 }
 0x11a   :  { %v235_v28 = vsub.f32 0.0, %v234_v27 }
 0x11c   :  { %237 = vst.msk [vmem:[#allocation7] sm:$0x1] %vm236_vm0, %v235_v28 }
 0x11d   :  { %377 = dma.vmem_to_hbm [thread:$0]  %s373_s30, 16, %s375_s7, [#allocation4]  }
 0x11e   :  { %501 = dma.done.wait [#allocation4], 16  }
 0x11f   :  { %502 = vsyncadd [#allocation4], 4294967280 }
 0x120   :  { %390 = vsyncpa [#allocation3], 1 }
 0x121   :  { %391 = vsyncpa [#allocation6], 1 }
 0x122   :  { %392 = vsyncpa [#allocation4], 1 }

</bundles_post_ra>
